<compile_context>
chip_gen: v6e
topology: v6e:2x2x1
jax: 0.10.0
libtpu: 0.0.40
codegen_flags: <defaults>
</compile_context>

<pallas_src>
import functools
import math

import jax
import jax.numpy as jnp
from jax.experimental import pallas as pl
from jax.experimental.pallas import tpu as pltpu

_LANE = 128
_SUBLANE = 8


def _ceil_to(x, m):
    return -(-x // m) * m


def _chip_caps():
    """Returns (per-block input-byte cap, vmem_limit_bytes, split_batch_for_megacore)."""
    vmem_bytes = None
    try:
        info = pltpu.get_tpu_info()
        vmem_bytes = getattr(info, "vmem_capacity_bytes", None)
    except Exception:
        vmem_bytes = None
    if vmem_bytes is not None and vmem_bytes > 64 * 1024 * 1024:
        # v5e / v6e: 128 MiB VMEM, one TensorCore per chip -> big tiles, no split.
        return 8 * 1024 * 1024, 64 * 1024 * 1024, False
    # v7x (64 MiB VMEM per TC, 2 TCs) or unknown backend: tighter caps,
    # and prefer >=2 batch blocks so both TensorCores get work.
    return 4 * 1024 * 1024, 48 * 1024 * 1024, True


def _infonce_kernel(x_ref, out_ref, m_sc, l_sc, z0_sc, *,
                    block_rows, true_batch, mask_rows):
    """Processes one (TB, TK) logits tile with an online logsumexp over K."""
    # All grid-position reads happen OUTSIDE pl.when bodies (program_id has no
    # lowering inside the cond sub-jaxpr in interpret mode).
    i = pl.program_id(0)
    k = pl.program_id(1)
    last_k = pl.num_programs(1) - 1

    # Single native-dtype load for this tile (bf16 stays bf16 on the wire).
    x = x_ref[...]

    @pl.when(k == 0)
    def _init():
        m_sc[...] = jnp.full_like(m_sc, -jnp.inf)
        l_sc[...] = jnp.zeros_like(l_sc)
        # Labels are all class 0 -> target logit lives in the k==0 tile only;
        # reuse the already-loaded tile instead of a second masked load.
        z0_sc[...] = x[:, 0:1].astype(jnp.float32)

    m_prev = m_sc[...]                                            # (TB, 1) f32
    # Row max on the native dtype; upcast fused into the exp (no full f32 copy).
    row_max = jnp.max(x, axis=-1, keepdims=True).astype(jnp.float32)
    m_new = jnp.maximum(m_prev, row_max)
    alpha = jnp.exp(m_prev - m_new)               # rescale the running sum
    p = jnp.exp(x.astype(jnp.float32) - m_new)                    # (TB, TK) f32
    # Row-sum kept on the VALU/XLU: kernel is HBM-bandwidth bound on v5e/v6e.
    l_sc[...] = alpha * l_sc[...] + jnp.sum(p, axis=-1, keepdims=True)
    m_sc[...] = m_new

    if mask_rows:
        rid = i * block_rows + jax.lax.broadcasted_iota(
            jnp.int32, (block_rows, 1), 0)

    @pl.when(k == last_k)
    def _finalize():
        # Per-example loss: logsumexp(x_i) - x_i[0]
        per_row = m_sc[...] + jnp.log(l_sc[...]) - z0_sc[...]     # (TB, 1)
        if mask_rows:  # zero rows that exist only because of batch padding
            per_row2 = jnp.where(rid < true_batch, per_row, 0.0)
        else:
            per_row2 = per_row
        # Lane/sublane-aligned partial-sum tile (unmasked stores).
        out_ref[...] = jnp.broadcast_to(jnp.sum(per_row2), out_ref.shape)


def _infonce_gcc_pallas(x2d, *, block_rows=None, block_k=None):
    B, K = x2d.shape
    itemsize = jnp.dtype(x2d.dtype).itemsize
    block_cap, vmem_limit, split_batch = _chip_caps()

    # ---- K tile: whole K if an (8, K) input-dtype slab fits the cap ----------
    if block_k is not None:
        TK = int(block_k)
        if TK >= K:
            TK, Kp = K, K
        else:
            TK = max(_LANE, (TK // _LANE) * _LANE)
            Kp = _ceil_to(K, TK)
    elif itemsize * _SUBLANE * K <= block_cap:
        TK, Kp = K, K
    else:
        TK = max(_LANE, (block_cap // (itemsize * _SUBLANE)) // _LANE * _LANE)
        # Prefer a lane-multiple tile that divides K (avoids the HBM pad copy).
        t, found = TK, 0
        while t >= max(_LANE, TK // 2):
            if K % t == 0:
                found = t
                break
            t -= _LANE
        if found:
            TK, Kp = found, K
        else:
            Kp = _ceil_to(K, TK)

    # ---- batch tile sized purely by the (input-dtype) byte cap ---------------
    rows_cap = block_cap // (itemsize * TK)
    TB_cap = max(_SUBLANE, (rows_cap // _SUBLANE) * _SUBLANE)

    if block_rows is not None:
        TB = int(block_rows)
        if TB >= B:
            TB, Bp = B, B
        else:
            TB = max(_SUBLANE, (TB // _SUBLANE) * _SUBLANE)
            Bp = _ceil_to(B, TB)
    elif TB_cap >= B:
        if split_batch and B >= 16 and B % 16 == 0:
            # v7x megacore: two clean batch blocks (no padding needed).
            TB, Bp = B // 2, B
        else:
            TB, Bp = B, B                         # single batch block (full dim)
    else:
        # Prefer a multiple-of-8 tile that divides B (no pad); accept down to
        # a quarter of the cap before falling back to padding + row masking.
        t, found = TB_cap, 0
        min_accept = max(_SUBLANE, TB_cap // 4)
        while t >= min_accept:
            if B % t == 0:
                found = t
                break
            t -= _SUBLANE
        if found:
            TB, Bp = found, B
        else:
            TB = TB_cap
            Bp = _ceil_to(B, TB)

    # ---- pad only when unavoidable: -inf along K (exp -> 0), zero rows -------
    xp = x2d
    if Kp > K:
        xp = jnp.pad(xp, ((0, 0), (0, Kp - K)), constant_values=-jnp.inf)
    if Bp > B:
        xp = jnp.pad(xp, ((0, Bp - B), (0, 0)))

    nb, nk = Bp // TB, Kp // TK

    kernel = functools.partial(
        _infonce_kernel,
        block_rows=TB,
        true_batch=B,
        mask_rows=(Bp > B),
    )

    out = pl.pallas_call(
        kernel,
        out_shape=jax.ShapeDtypeStruct((nb, _SUBLANE, _LANE), jnp.float32),
        grid_spec=pltpu.PrefetchScalarGridSpec(
            num_scalar_prefetch=0,
            grid=(nb, nk),
            in_specs=[pl.BlockSpec((TB, TK), lambda i, k: (i, k))],
            out_specs=pl.BlockSpec((1, _SUBLANE, _LANE), lambda i, k: (i, 0, 0)),
            scratch_shapes=[
                pltpu.VMEM((TB, 1), jnp.float32),   # running max  m
                pltpu.VMEM((TB, 1), jnp.float32),   # running sum  l
                pltpu.VMEM((TB, 1), jnp.float32),   # label-0 logit z0
            ],
        ),
        compiler_params=pltpu.CompilerParams(
            dimension_semantics=("parallel", "arbitrary"),
            vmem_limit_bytes=vmem_limit,
        ),
    )(xp)

    # Finish the mean outside the kernel: sum of per-block partials * 1/B.
    return jnp.sum(out[:, 0, 0]) * (1.0 / B)


def infonce_gcc_loss(x, *, block_rows=None, block_k=None):
    """Forward of infonce_GCC: CrossEntropy(x.squeeze(), zeros(B)), mean reduction."""
    B = x.shape[0]
    K = math.prod(x.shape[1:])
    x2d = x.reshape(B, K)   # explicit reshape (squeeze() breaks for B==1/K==1)
    return _infonce_gcc_pallas(x2d, block_rows=block_rows, block_k=block_k)


def _reference_loss(x):
    # Pure-JAX reference: cross-entropy vs. all-zero labels, mean reduction.
    B = x.shape[0]
    x2d = x.reshape(B, -1).astype(jnp.float32)
    lse = jax.scipy.special.logsumexp(x2d, axis=-1)
    return jnp.mean(lse - x2d[:, 0])


if __name__ == "__main__":
    key = jax.random.PRNGKey(0)
    k1, k2 = jax.random.split(key)

    # Case 1: shaped like the PyTorch caller, (B, K, 1, 1) float32 logits.
    B, K = 8, 128
    x = jax.random.normal(k1, (B, K, 1, 1), dtype=jnp.float32)
    loss = infonce_gcc_loss(x)
    jax.block_until_ready(loss)
    ref = _reference_loss(x)
    assert jnp.allclose(loss, ref, rtol=1e-5, atol=1e-5), (loss, ref)

    # Case 2: bf16 logits, ragged batch, forced batch/K tiling -> exercises the
    # online-logsumexp, padding and row-masking paths.
    B2, K2 = 10, 384
    x2 = (3.0 * jax.random.normal(k2, (B2, K2), dtype=jnp.float32)).astype(jnp.bfloat16)
    loss2 = infonce_gcc_loss(x2, block_rows=8, block_k=128)
    jax.block_until_ready(loss2)
    ref2 = _reference_loss(x2)
    assert jnp.allclose(loss2, ref2, rtol=1e-4, atol=1e-4), (loss2, ref2)

    print("KERNEL_OK")
</pallas_src>

<mosaic_0001>
module attributes {stable_mosaic.version = 11 : i64} {
  func.func @_infonce_kernel(%arg0: i32, %arg1: i32, %arg2: memref<8x128xf32, #tpu.memory_space<vmem>>, %arg3: memref<1x8x128xf32, #tpu.memory_space<vmem>>, %arg4: memref<8x1xf32, #tpu.memory_space<vmem>>, %arg5: memref<8x1xf32, #tpu.memory_space<vmem>>, %arg6: memref<8x1xf32, #tpu.memory_space<vmem>>) attributes {dimension_semantics = [#tpu.dimension_semantics<parallel>, #tpu.dimension_semantics<arbitrary>], iteration_bounds = array<i64: 1, 1>, scalar_prefetch = 0 : i64, scratch_operands = 3 : i64, tpu.core_type = #tpu.core_type<tc>, window_params = [{transform_indices = @transform_0, window_bounds = array<i64: 8, 128>}, {transform_indices = @transform_1, window_bounds = array<i64: 1, 8, 128>}]} {
    %c0 = arith.constant 0 : index
    %c0_0 = arith.constant 0 : index
    %0 = vector.load %arg2[%c0, %c0_0] : memref<8x128xf32, #tpu.memory_space<vmem>>, vector<8x128xf32>
    %c0_i32 = arith.constant 0 : i32
    %1 = arith.cmpi eq, %arg1, %c0_i32 : i32
    %2 = arith.extui %1 : i1 to i32
    %c0_i32_1 = arith.constant 0 : i32
    %3 = arith.cmpi ne, %2, %c0_i32_1 : i32
    scf.if %3 {
      %cst_13 = arith.constant 0xFF800000 : f32
      %23 = vector.broadcast %cst_13 : f32 to vector<8x1xf32>
      %c0_14 = arith.constant 0 : index
      %c0_15 = arith.constant 0 : index
      %24 = vector.load %arg4[%c0_14, %c0_15] : memref<8x1xf32, #tpu.memory_space<vmem>>, vector<8x1xf32>
      tpu.vector_store %arg4[%c0_14, %c0_15], %23 {strides = array<i32>} : memref<8x1xf32, #tpu.memory_space<vmem>>, vector<8x1xf32>,
      %cst_16 = arith.constant 0.000000e+00 : f32
      %25 = vector.broadcast %cst_16 : f32 to vector<8x1xf32>
      %c0_17 = arith.constant 0 : index
      %c0_18 = arith.constant 0 : index
      %26 = vector.load %arg5[%c0_17, %c0_18] : memref<8x1xf32, #tpu.memory_space<vmem>>, vector<8x1xf32>
      tpu.vector_store %arg5[%c0_17, %c0_18], %25 {strides = array<i32>} : memref<8x1xf32, #tpu.memory_space<vmem>>, vector<8x1xf32>,
      %27 = vector.extract_strided_slice %0 {offsets = [0, 0], sizes = [8, 1], strides = [1, 1]} : vector<8x128xf32> to vector<8x1xf32>
      %c0_19 = arith.constant 0 : index
      %c0_20 = arith.constant 0 : index
      %28 = vector.load %arg6[%c0_19, %c0_20] : memref<8x1xf32, #tpu.memory_space<vmem>>, vector<8x1xf32>
      tpu.vector_store %arg6[%c0_19, %c0_20], %27 {strides = array<i32>} : memref<8x1xf32, #tpu.memory_space<vmem>>, vector<8x1xf32>,
    } else {
    }
    %c0_2 = arith.constant 0 : index
    %c0_3 = arith.constant 0 : index
    %4 = vector.load %arg4[%c0_2, %c0_3] : memref<8x1xf32, #tpu.memory_space<vmem>>, vector<8x1xf32>
    %cst = arith.constant dense<0xFF800000> : vector<8xf32>
    %5 = vector.multi_reduction <maximumf>, %0, %cst [1] : vector<8x128xf32> to vector<8xf32>
    %6 = vector.shape_cast %5 : vector<8xf32> to vector<8x1xf32>
    %7 = arith.maximumf %4, %6 : vector<8x1xf32>
    %8 = arith.subf %4, %7 : vector<8x1xf32>
    %9 = math.exp %8 : vector<8x1xf32>
    %10 = vector.broadcast %7 : vector<8x1xf32> to vector<8x128xf32>
    %11 = arith.subf %0, %10 : vector<8x128xf32>
    %12 = math.exp %11 : vector<8x128xf32>
    %c0_4 = arith.constant 0 : index
    %c0_5 = arith.constant 0 : index
    %13 = vector.load %arg5[%c0_4, %c0_5] : memref<8x1xf32, #tpu.memory_space<vmem>>, vector<8x1xf32>
    %14 = arith.mulf %9, %13 : vector<8x1xf32>
    %cst_6 = arith.constant dense<0.000000e+00> : vector<8xf32>
    %15 = vector.multi_reduction <add>, %12, %cst_6 [1] : vector<8x128xf32> to vector<8xf32>
    %16 = vector.shape_cast %15 : vector<8xf32> to vector<8x1xf32>
    %17 = arith.addf %14, %16 : vector<8x1xf32>
    %c0_7 = arith.constant 0 : index
    %c0_8 = arith.constant 0 : index
    %18 = vector.load %arg5[%c0_7, %c0_8] : memref<8x1xf32, #tpu.memory_space<vmem>>, vector<8x1xf32>
    tpu.vector_store %arg5[%c0_7, %c0_8], %17 {strides = array<i32>} : memref<8x1xf32, #tpu.memory_space<vmem>>, vector<8x1xf32>,
    %c0_9 = arith.constant 0 : index
    %c0_10 = arith.constant 0 : index
    %19 = vector.load %arg4[%c0_9, %c0_10] : memref<8x1xf32, #tpu.memory_space<vmem>>, vector<8x1xf32>
    tpu.vector_store %arg4[%c0_9, %c0_10], %7 {strides = array<i32>} : memref<8x1xf32, #tpu.memory_space<vmem>>, vector<8x1xf32>,
    %c0_i32_11 = arith.constant 0 : i32
    %20 = arith.cmpi eq, %arg1, %c0_i32_11 : i32
    %21 = arith.extui %20 : i1 to i32
    %c0_i32_12 = arith.constant 0 : i32
    %22 = arith.cmpi ne, %21, %c0_i32_12 : i32
    scf.if %22 {
      %c0_13 = arith.constant 0 : index
      %c0_14 = arith.constant 0 : index
      %23 = vector.load %arg4[%c0_13, %c0_14] : memref<8x1xf32, #tpu.memory_space<vmem>>, vector<8x1xf32>
      %c0_15 = arith.constant 0 : index
      %c0_16 = arith.constant 0 : index
      %24 = vector.load %arg5[%c0_15, %c0_16] : memref<8x1xf32, #tpu.memory_space<vmem>>, vector<8x1xf32>
      %25 = math.log %24 : vector<8x1xf32>
      %26 = arith.addf %23, %25 : vector<8x1xf32>
      %c0_17 = arith.constant 0 : index
      %c0_18 = arith.constant 0 : index
      %27 = vector.load %arg6[%c0_17, %c0_18] : memref<8x1xf32, #tpu.memory_space<vmem>>, vector<8x1xf32>
      %28 = arith.subf %26, %27 : vector<8x1xf32>
      %29 = vector.shape_cast %28 : vector<8x1xf32> to vector<1x8x1xf32>
      %cst_19 = arith.constant dense<0.000000e+00> : vector<1xf32>
      %30 = vector.multi_reduction <add>, %29, %cst_19 [1, 2] : vector<1x8x1xf32> to vector<1xf32>
      %31 = vector.shape_cast %30 : vector<1xf32> to vector<1x1x1xf32>
      %32 = vector.extract %31[0, 0, 0] : f32 from vector<1x1x1xf32>
      %33 = vector.broadcast %32 : f32 to vector<1x8x128xf32>
      %c0_20 = arith.constant 0 : index
      %c0_21 = arith.constant 0 : index
      %c0_22 = arith.constant 0 : index
      %34 = vector.load %arg3[%c0_20, %c0_21, %c0_22] : memref<1x8x128xf32, #tpu.memory_space<vmem>>, vector<1x8x128xf32>
      tpu.vector_store %arg3[%c0_20, %c0_21, %c0_22], %33 {strides = array<i32>} : memref<1x8x128xf32, #tpu.memory_space<vmem>>, vector<1x8x128xf32>,
    } else {
    }
    return
  }
  func.func @transform_0(%arg0: i32, %arg1: i32) -> (i32, i32) {
    %c0_i32 = arith.constant 0 : i32
    return %arg0, %arg1 : i32, i32
  }
  func.func @transform_1(%arg0: i32, %arg1: i32) -> (i32, i32, i32) {
    %c0_i32 = arith.constant 0 : i32
    %c0_i32_0 = arith.constant 0 : i32
    %c0_i32_1 = arith.constant 0 : i32
    return %arg0, %c0_i32, %c0_i32_0 : i32, i32, i32
  }
}

</mosaic_0001>

<bundles_post_ra>
// kernel: tpu_custom_call.1
= control target key start
LH: loop header
LB: loop body
LE: loop exit
PB: predicated region body
PF: predicated region fallthrough
CT: control target
= control target key end

     0   :  { %6 = vsyncpa [#allocation6], 0  ;;  %s175_s0 = inlined_call_operand.hbm [shape: f32[8,128], index: 0, kind: input, shape index: {}]   ;;  %s176_s1 = inlined_call_operand.hbm [shape: f32[1,8,128], index: 1, kind: output, shape index: {}]  }
   0x1   :  { %7 = vsyncpa [#allocation7], 0  ;;  %s148_s6 = smov [#allocation5]  }
   0x2   :  { %s14_s7 = sshll.u32 %s148_s6, 4  ;;  %s15_s7 = int_to_ptr.vmem [resolvable:$true] %s14_s7 }
   0x3   :  { %s112_s8 = scalar_lea.vmem %s15_s7, 128  ;;  %p117_p1 = scmp.lt.s32.totalorder %s15_s7, %s15_s7 }
   0x4   :  { %p113_p0 = scmp.ne.s32.totalorder %s15_s7, %s112_s8  ;;  %p118_p2 = scmp.lt.s32.totalorder %s112_s8, %s112_s8 }
   0x6   :  { %p119_p3 = por %p118_p2, %p117_p1 }
   0x8   :  { %p120_p4 = pnand %p119_p3, %p113_p0 }
   0xa   :  { %123 = shalt.err (!%p120_p4)
}
   0xb   :  { %17 = dma.hbm_to_vmem [thread:$0]  %s175_s0, 128, %s15_s7, [#allocation6]  }
   0xc   :  { %144 = dma.done.wait [#allocation6], 128  }
   0xd   :  { %145 = vsyncadd [#allocation6], 4294967168  ;;  %vm26_vm0 = vcmask 7168   ;;  %v149_v0 = vmov -inf   ;;  %v21_v1 = vld [vmem:[#allocation5] sm:$0xff]  ;;  %v150_v2 = vmov 0  }
   0xe   :  { %27 = vst.msk [vmem:[#allocation2] sm:$0xff] %vm26_vm0, %v149_v0  ;;  %31 = vmax.xlane.f32.xlu0 %v21_v1  ;;  %29 = vst.msk [vmem:[#allocation4] sm:$0xff] %vm26_vm0, %v21_v1  ;;  %v151_v3 = vmov 0.0   ;;  %s152_s0 = smov [#allocation8]  }
   0xf   :  { %97 = vset.pattern.permute.xlu0 %v150_v2  ;;  %28 = vst.msk [vmem:[#allocation3] sm:$0xff] %vm26_vm0, %v151_v3  ;;  %s81_s11 = sshll.u32 %s152_s0, 4  ;;  %s82_s11 = int_to_ptr.vmem [resolvable:$true] %s81_s11 }
  0x10   :  { %s124_s13 = scalar_lea.vmem %s82_s11, 128  ;;  %p129_p6 = scmp.lt.s32.totalorder %s82_s11, %s82_s11 }
  0x11   :  { %p125_p5 = scmp.ne.s32.totalorder %s82_s11, %s124_s13  ;;  %p130_p7 = scmp.lt.s32.totalorder %s124_s13, %s124_s13 }
  0x13   :  { %p131_p8 = por %p130_p7, %p129_p6 }
  0x15   :  { %v30_v4 = vld [vmem:[#allocation2] sm:$0xff]  ;;  %v61_v22 = vld [vmem:[#allocation4] sm:$0xff]  ;;  %p132_p9 = pnand %p131_p8, %p125_p5 }
  0x16   :  { %v45_v14 = vld [vmem:[#allocation3] sm:$0xff] }
  0x97   :  { %v32_v5 = vpop.xlane.xlu0 %31 }
  0x98   :  { %v33_v6 = vmax.f32 %v30_v4, %v32_v5 }
  0x9a   :  { %v34_v7 = vsub.f32 %v30_v4, %v33_v6  ;;  %52 = vst.msk [vmem:[#allocation2] sm:$0xff] %vm26_vm0, %v33_v6  ;;  %39 = vperm.xlu0 %97, %v33_v6  }
  0x9c   :  { %v35_v12 = vmul.f32 1.442695, %v34_v7 }
  0xa1   :  { %v56_v21 = vld [vmem:[#allocation2] sm:$0xff] }
 0x115   :  { %v40_v8 = vpop.permute.xlu0 %39 }
 0x116   :  { %v42_v9 = vsub.f32 %v21_v1, %v40_v8 }
 0x118   :  { %v43_v10 = vmul.f32 1.442695, %v42_v9 }
 0x11a   :  { %98 = vpow2.f32 %v43_v10 }
 0x11b   :  { %100 = vpow2.f32 %v35_v12 }
 0x127   :  { %v99_v11 = vpop.eup %98 }
 0x128   :  { %47 = vadd.xlane.f32.xlu1 %v99_v11  ;;  %v101_v13 = vpop.eup %100 }
 0x129   :  { %v46_v15 = vmul.f32 %v101_v13, %v45_v14 }
 0x1b1   :  { %v48_v16 = vpop.xlane.xlu1 %47 }
 0x1b2   :  { %v49_v17 = vadd.f32 %v48_v16, %v46_v15 }
 0x1b4   :  { %51 = vst.msk [vmem:[#allocation3] sm:$0xff] %vm26_vm0, %v49_v17 }
 0x1bb   :  { %v57_v18 = vld [vmem:[#allocation3] sm:$0xff] }
 0x1bc   :  { %102 = vlog2.f32 %v57_v18 }
 0x1c9   :  { %v103_v19 = vpop.eup %102 }
 0x1ca   :  { %v59_v20 = vmul.f32 0.6931472, %v103_v19 }
 0x1cc   :  { %v60_v23 = vadd.f32 %v59_v20, %v56_v21 }
 0x1ce   :  { %v62_v24 = vsub.f32 %v60_v23, %v61_v22 }
 0x1d0   :  { %v63_v25 = vsel %vm26_vm0, %v62_v24, 0.0 }
 0x1d1   :  { %64 = vadd.xlane.f32.xlu1 %v63_v25 }
 0x25a   :  { %v65_v26 = vpop.xlane.xlu1 %64 }
 0x25b   :  { %v66_v27 = vrot.slane %v65_v26, 4 }
 0x25d   :  { %v67_v28 = vadd.f32 %v66_v27, %v65_v26 }
 0x25f   :  { %v68_v29 = vrot.slane %v67_v28, 2 }
 0x261   :  { %v69_v30 = vadd.f32 %v68_v29, %v67_v28 }
 0x263   :  { %v70_v31 = vrot.slane %v69_v30, 1 }
 0x265   :  { %v71_v32 = vadd.f32 %v70_v31, %v69_v30 }
 0x267   :  { %90 = vpush %v71_v32 }
 0x298   :  { %s91_s12 = spop %90 }
 0x299   :  { %v73_v33 = vstv %s91_s12 }
 0x29a   :  { %74 = vst [vmem:[#allocation8] sm:$0xff] %v73_v33 }
 0x29b   :  { %135 = shalt.err (!%p132_p9)
}
 0x29c   :  { %84 = dma.vmem_to_hbm [thread:$0]  %s82_s11, 128, %s176_s1, [#allocation7]  }
 0x29d   :  { %146 = dma.done.wait [#allocation7], 128  }
 0x29e   :  { %147 = vsyncadd [#allocation7], 4294967168 }
 0x29f   :  { %88 = vsyncpa [#allocation6], 1 }
 0x2a0   :  { %89 = vsyncpa [#allocation7], 1 }

</bundles_post_ra>
